<compile_context>
chip_gen: v5e
topology: v5e:2x2
jax: 0.10.0
libtpu: 0.0.40
codegen_flags: <defaults>
</compile_context>

<pallas_src>
import functools

import jax
import jax.numpy as jnp
from jax.experimental import pallas as pl
from jax.experimental.pallas import tpu as pltpu


_VMEM_LIMIT = 48 * 1024 * 1024   # leaves headroom on v7x (64 MiB physical VMEM)


def _round_up(x, m):
    return ((x + m - 1) // m) * m


def _pad_to(a, shape):
    pads = tuple((0, t - s) for s, t in zip(a.shape, shape))
    if all(p == (0, 0) for p in pads):
        return a
    return jnp.pad(a, pads)


# ----------------------------- LayerNorm kernel -----------------------------

def _layernorm_kernel(x_ref, g_ref, b_ref, o_ref):
    x = x_ref[...].astype(jnp.float32)
    mean = jnp.mean(x, axis=-1, keepdims=True)
    xc = x - mean
    var = jnp.mean(xc * xc, axis=-1, keepdims=True)
    inv = jax.lax.rsqrt(var + 1e-6)
    o_ref[...] = ((xc * inv) * g_ref[...] + b_ref[...]).astype(o_ref.dtype)


def layernorm(x2d, gamma, beta, out_dtype=jnp.bfloat16, tm=512):
    M, C = x2d.shape
    tm = M if M <= tm else tm               # tm multiple of 8 or == full M
    Mp = _round_up(M, tm)
    xp = _pad_to(x2d, (Mp, C))
    out = pl.pallas_call(
        _layernorm_kernel,
        out_shape=jax.ShapeDtypeStruct((Mp, C), out_dtype),
        grid=(Mp // tm,),
        in_specs=[pl.BlockSpec((tm, C), lambda i: (i, 0)),
                  pl.BlockSpec((1, C), lambda i: (0, 0)),
                  pl.BlockSpec((1, C), lambda i: (0, 0))],
        out_specs=pl.BlockSpec((tm, C), lambda i: (i, 0)),
        compiler_params=pltpu.CompilerParams(
            dimension_semantics=("parallel",),
            vmem_limit_bytes=_VMEM_LIMIT),
    )(xp, gamma.reshape(1, C).astype(jnp.float32),
      beta.reshape(1, C).astype(jnp.float32))
    return out[:M] if Mp != M else out


# ----------------------------- Tiled matmul + bias ---------------------------

def _matmul_bias_kernel(a_ref, w_ref, b_ref, o_ref, acc_ref):
    @pl.when(pl.program_id(2) == 0)
    def _():
        acc_ref[...] = jnp.zeros_like(acc_ref)
    acc_ref[...] += jnp.dot(a_ref[...].astype(jnp.bfloat16),
                            w_ref[...].astype(jnp.bfloat16),
                            preferred_element_type=jnp.float32)

    @pl.when(pl.program_id(2) == pl.num_programs(2) - 1)
    def _():
        o_ref[...] = (acc_ref[...] + b_ref[...].astype(jnp.float32)
                      ).astype(o_ref.dtype)


def _matmul_bias_res_kernel(a_ref, w_ref, b_ref, r_ref, o_ref, acc_ref):
    @pl.when(pl.program_id(2) == 0)
    def _():
        acc_ref[...] = jnp.zeros_like(acc_ref)
    acc_ref[...] += jnp.dot(a_ref[...].astype(jnp.bfloat16),
                            w_ref[...].astype(jnp.bfloat16),
                            preferred_element_type=jnp.float32)

    @pl.when(pl.program_id(2) == pl.num_programs(2) - 1)
    def _():
        o_ref[...] = (acc_ref[...] + b_ref[...].astype(jnp.float32)
                      + r_ref[...].astype(jnp.float32)).astype(o_ref.dtype)


def matmul_bias(a, w, b, residual=None, out_dtype=jnp.float32,
                tm=256, tn=256, tk=512):
    """a:(M,K) @ w:(K,N) + b:(N,)  [+ residual:(M,N)]  -> (M,N) out_dtype."""
    M, K = a.shape
    N = w.shape[1]
    # tile = full dim when small (block == full dim is always legal), otherwise
    # 8/128-aligned tiles with zero padding up to a tile multiple.
    tm = M if M <= tm else tm
    tk = K if K <= tk else tk
    tn = N if N <= tn else tn
    Mp, Kp, Np = _round_up(M, tm), _round_up(K, tk), _round_up(N, tn)

    a_p = _pad_to(a, (Mp, Kp))
    w_p = _pad_to(w, (Kp, Np))
    b_p = _pad_to(b.reshape(1, N), (1, Np))

    grid = (Mp // tm, Np // tn, Kp // tk)
    a_spec = pl.BlockSpec((tm, tk), lambda i, j, k: (i, k))
    w_spec = pl.BlockSpec((tk, tn), lambda i, j, k: (k, j))
    b_spec = pl.BlockSpec((1, tn), lambda i, j, k: (0, j))
    o_spec = pl.BlockSpec((tm, tn), lambda i, j, k: (i, j))
    cp = pltpu.CompilerParams(
        dimension_semantics=("parallel", "parallel", "arbitrary"),
        vmem_limit_bytes=_VMEM_LIMIT)
    scratch = [pltpu.VMEM((tm, tn), jnp.float32)]

    if residual is None:
        out = pl.pallas_call(
            _matmul_bias_kernel,
            out_shape=jax.ShapeDtypeStruct((Mp, Np), out_dtype),
            grid=grid,
            in_specs=[a_spec, w_spec, b_spec],
            out_specs=o_spec,
            scratch_shapes=scratch,
            compiler_params=cp,
        )(a_p, w_p, b_p)
    else:
        r_p = _pad_to(residual, (Mp, Np))
        out = pl.pallas_call(
            _matmul_bias_res_kernel,
            out_shape=jax.ShapeDtypeStruct((Mp, Np), out_dtype),
            grid=grid,
            in_specs=[a_spec, w_spec, b_spec,
                      pl.BlockSpec((tm, tn), lambda i, j, k: (i, j))],
            out_specs=o_spec,
            scratch_shapes=scratch,
            compiler_params=cp,
        )(a_p, w_p, b_p, r_p)

    if Mp != M or Np != N:
        out = out[:M, :N]
    return out


# ----------------------------- Attention core kernel -------------------------

def _attention_kernel(q_ref, kv_ref, o_ref, *, n_heads, scale):
    q = q_ref[0]                                   # (Lq, C)   bf16
    kv = kv_ref[0]                                 # (Lk, 2C)  bf16
    C = q.shape[-1]
    Dh = C // n_heads
    k_all = kv[:, :C]
    v_all = kv[:, C:]
    outs = []
    for h in range(n_heads):                       # static unroll over heads
        lo, hi = h * Dh, (h + 1) * Dh
        qh = q[:, lo:hi]
        kh = k_all[:, lo:hi]
        vh = v_all[:, lo:hi]
        # contract dim 1 of both operands -> no K transpose materialized
        s = jax.lax.dot_general(qh, kh, (((1,), (1,)), ((), ())),
                                preferred_element_type=jnp.float32) * scale
        m = jnp.max(s, axis=-1, keepdims=True)
        p = jnp.exp(s - m)
        l = jnp.sum(p, axis=-1, keepdims=True)
        oh = jnp.dot(p.astype(vh.dtype), vh, preferred_element_type=jnp.float32)
        outs.append(oh * pl.reciprocal(l, approx=True))
    o_ref[0] = jnp.concatenate(outs, axis=-1).astype(o_ref.dtype)


def attention_core(q, kv, n_heads):
    # q: (N, Lq, C) bf16;  kv: (N, Lk, 2C) bf16 (K and V concatenated on lanes)
    N, Lq, C = q.shape
    Lk = kv.shape[1]
    Dh = C // n_heads
    scale = 1.0 / (Dh ** 0.5)
    return pl.pallas_call(
        functools.partial(_attention_kernel, n_heads=n_heads, scale=scale),
        out_shape=jax.ShapeDtypeStruct((N, Lq, C), jnp.bfloat16),
        grid=(N,),
        in_specs=[pl.BlockSpec((1, Lq, C), lambda b: (b, 0, 0)),
                  pl.BlockSpec((1, Lk, 2 * C), lambda b: (b, 0, 0))],
        out_specs=pl.BlockSpec((1, Lq, C), lambda b: (b, 0, 0)),
        compiler_params=pltpu.CompilerParams(
            dimension_semantics=("parallel",),
            vmem_limit_bytes=_VMEM_LIMIT),
    )(q, kv)


# ------------------------ Depthwise 3x3 conv + GELU kernel -------------------

def _erf_approx(x):
    # Abramowitz & Stegun 7.1.26 (|err| < 1.5e-7) — exact erf at f32 precision.
    a1, a2, a3, a4, a5 = (0.254829592, -0.284496736, 1.421413741,
                          -1.453152027, 1.061405429)
    p = 0.3275911
    s = jnp.where(x >= 0.0, 1.0, -1.0)
    ax = jnp.abs(x)
    t = 1.0 / (1.0 + p * ax)
    poly = ((((a5 * t + a4) * t + a3) * t + a2) * t + a1) * t
    return s * (1.0 - poly * jnp.exp(-ax * ax))


def _gelu_exact(x):
    # nn.GELU() default (erf-based) semantics.
    return 0.5 * x * (1.0 + _erf_approx(x * 0.7071067811865475))


def _dwconv_gelu_kernel(xp_ref, w_ref, b_ref, o_ref, *, H, W):
    xp = xp_ref[0].astype(jnp.float32)       # (H+2, W+2, tc) — zero-padded halo
    w = w_ref[...].astype(jnp.float32)       # (3, 3, tc)
    acc = jnp.zeros((H, W, xp.shape[-1]), jnp.float32)
    # TODO(synk): pltpu.roll-based shifts could offload these sublane offsets to the XLU.
    for i in range(3):
        for j in range(3):
            acc = acc + xp[i:i + H, j:j + W, :] * w[i, j, :]
    acc = acc + b_ref[0, 0].astype(jnp.float32)
    o_ref[0] = _gelu_exact(acc).astype(o_ref.dtype)


def dwconv_gelu(x_sp, w3, bias, out_dtype=jnp.bfloat16):
    # x_sp: (N, H, W, Cm); w3: (3, 3, Cm); bias: (Cm,)
    N, H, W, Cm = x_sp.shape
    if Cm % 256 == 0:
        tc = 256
    elif Cm % 128 == 0:
        tc = 128
    else:
        tc = Cm
    xp = jnp.pad(x_sp, ((0, 0), (1, 1), (1, 1), (0, 0)))   # halo padding (glue)
    return pl.pallas_call(
        functools.partial(_dwconv_gelu_kernel, H=H, W=W),
        out_shape=jax.ShapeDtypeStruct((N, H, W, Cm), out_dtype),
        grid=(N, Cm // tc),
        in_specs=[pl.BlockSpec((1, H + 2, W + 2, tc), lambda b, c: (b, 0, 0, c)),
                  pl.BlockSpec((3, 3, tc), lambda b, c: (0, 0, c)),
                  pl.BlockSpec((1, 1, tc), lambda b, c: (0, 0, c))],
        out_specs=pl.BlockSpec((1, H, W, tc), lambda b, c: (b, 0, 0, c)),
        compiler_params=pltpu.CompilerParams(
            dimension_semantics=("parallel", "parallel"),
            vmem_limit_bytes=_VMEM_LIMIT),
    )(xp, w3, bias.reshape(1, 1, Cm))


# ----------------------------- Full TransformerLayer -------------------------

def transformer_layer(params, x, h, w):
    """x: (N, L, C) float32 with L = h*w.  Returns (N, L, C) float32."""
    N, L, C = x.shape
    R = params["reduce_ratio"]
    nH = params["n_heads"]

    # ---- attention branch:  x = x + DropPath(Attn(LN(x))) ----
    shortcut = x.reshape(N * L, C)                              # f32 residual stream
    xn = layernorm(shortcut, params["norm1_g"], params["norm1_b"])   # (N*L, C) bf16

    if R > 1:
        # spatial-reduction conv (kernel=R, stride=R) as im2col + matmul (bf16 patches)
        # TODO(synk): fold the RxR gather into the matmul index_map to skip the patches round trip.
        x_sp = xn.reshape(N, h, w, C)
        hr, wr = h // R, w // R
        patches = x_sp.reshape(N, hr, R, wr, R, C).transpose(0, 1, 3, 5, 2, 4)
        patches = patches.reshape(N * hr * wr, C * R * R)
        red = matmul_bias(patches, params["red_w"], params["red_b"],
                          out_dtype=jnp.float32)
        x_kv = layernorm(red, params["red_norm_g"], params["red_norm_b"])
        Lk = hr * wr
    else:
        x_kv = xn
        Lk = L

    # Q projection (C->C) and fused K/V projection (C->2C), bf16 outputs
    q = matmul_bias(xn, params["wq"], params["bq"], out_dtype=jnp.bfloat16)
    kv = matmul_bias(x_kv, params["wkv"], params["bkv"], out_dtype=jnp.bfloat16)

    # scaled-dot-product attention; head split/merge happens inside the kernel
    o = attention_core(q.reshape(N, L, C), kv.reshape(N, Lk, 2 * C), n_heads=nH)

    # output projection with fused residual add (DropPath = identity at inference)
    # TODO(synk): training-time stochastic depth (per-sample drop) not implemented.
    x1 = matmul_bias(o.reshape(N * L, C), params["wo"], params["bo"],
                     residual=shortcut, out_dtype=jnp.float32)       # (N*L, C) f32

    # ---- FFN branch:  x = x + DropPath(MixFFN(LN(x))) ----
    xn2 = layernorm(x1, params["norm2_g"], params["norm2_b"])         # bf16
    hdim = params["fc1_w"].shape[1]
    hidden = matmul_bias(xn2, params["fc1_w"], params["fc1_b"],
                         out_dtype=jnp.bfloat16)                      # (N*L, 4C) bf16
    hidden = dwconv_gelu(hidden.reshape(N, h, w, hdim),
                         params["dw_w"], params["dw_b"])              # dwconv + GELU
    out = matmul_bias(hidden.reshape(N * L, hdim),
                      params["fc2_w"], params["fc2_b"],
                      residual=x1, out_dtype=jnp.float32)             # fused residual

    return out.reshape(N, L, C)


# ----------------------------- deterministic params --------------------------

def make_params(key, embed_dim, n_heads, reduce_ratio):
    C = embed_dim
    Hd = 4 * C
    R = reduce_ratio
    ks = jax.random.split(key, 16)

    def nrm(k, shape, scale=0.02):
        return (scale * jax.random.normal(k, shape)).astype(jnp.float32)

    bf = lambda a: a.astype(jnp.bfloat16)

    # torch-format weights, converted to the layouts our kernels expect
    red_w_t = nrm(ks[0], (C, C, R, R))                  # Conv2d(C, C, R, stride=R)
    in_proj_w = nrm(ks[1], (3 * C, C))                  # nn.MultiheadAttention in_proj
    in_proj_b = nrm(ks[2], (3 * C,))
    out_proj_w = nrm(ks[3], (C, C))
    fc1_w_t = nrm(ks[4], (Hd, C))                       # nn.Linear(C, 4C)
    fc2_w_t = nrm(ks[5], (C, Hd))                       # nn.Linear(4C, C)
    dw_w_t = nrm(ks[6], (Hd, 1, 3, 3))                  # Conv2d(4C,4C,3,pad=1,groups=4C)

    wq = in_proj_w[:C].T
    wk = in_proj_w[C:2 * C].T
    wv = in_proj_w[2 * C:].T

    params = dict(
        reduce_ratio=R,
        n_heads=n_heads,
        norm1_g=1.0 + nrm(ks[7], (C,), 0.1),
        norm1_b=nrm(ks[8], (C,), 0.1),
        norm2_g=1.0 + nrm(ks[9], (C,), 0.1),
        norm2_b=nrm(ks[10], (C,), 0.1),
        red_w=bf(red_w_t.reshape(C, C * R * R).T),      # (C*R*R, C) for im2col matmul
        red_b=nrm(ks[11], (C,)),
        red_norm_g=1.0 + nrm(ks[12], (C,), 0.1),
        red_norm_b=nrm(ks[13], (C,), 0.1),
        wq=bf(wq), bq=in_proj_b[:C],
        wkv=bf(jnp.concatenate([wk, wv], axis=1)),      # fused K/V weight (C, 2C)
        bkv=jnp.concatenate([in_proj_b[C:2 * C], in_proj_b[2 * C:]]),
        wo=bf(out_proj_w.T), bo=nrm(ks[14], (C,)),
        fc1_w=bf(fc1_w_t.T), fc1_b=nrm(ks[15], (Hd,)),
        dw_w=bf(jnp.transpose(dw_w_t[:, 0], (1, 2, 0))),  # (3, 3, 4C) channel-last
        dw_b=jnp.zeros((Hd,), jnp.float32),
        fc2_w=bf(fc2_w_t.T), fc2_b=jnp.zeros((C,), jnp.float32),
    )
    return params


if __name__ == "__main__":
    key = jax.random.PRNGKey(0)
    k_x, k_p = jax.random.split(key)

    N, C, H, W = 2, 32, 8, 8
    n_heads, reduce_ratio = 2, 2
    L = H * W

    x = jax.random.normal(k_x, (N, L, C), dtype=jnp.float32)
    params = make_params(k_p, C, n_heads, reduce_ratio)

    out = transformer_layer(params, x, H, W)
    out = jax.block_until_ready(out)
    assert out.shape == (N, L, C) and out.dtype == jnp.float32
    assert bool(jnp.all(jnp.isfinite(out)))
    print("KERNEL_OK")
</pallas_src>

<mosaic_0001>
module attributes {stable_mosaic.version = 11 : i64} {
  func.func @_layernorm_kernel(%arg0: i32, %arg1: memref<128x32xf32, #tpu.memory_space<vmem>>, %arg2: memref<1x32xf32, #tpu.memory_space<vmem>>, %arg3: memref<1x32xf32, #tpu.memory_space<vmem>>, %arg4: memref<128x32xbf16, #tpu.memory_space<vmem>>) attributes {dimension_semantics = [#tpu.dimension_semantics<parallel>], iteration_bounds = array<i64: 1>, scalar_prefetch = 0 : i64, scratch_operands = 0 : i64, tpu.core_type = #tpu.core_type<tc>, window_params = [{transform_indices = @transform_0, window_bounds = array<i64: 128, 32>}, {pipeline_mode = #tpu.pipeline_mode<synchronous>, transform_indices = @transform_1, window_bounds = array<i64: 1, 32>}, {pipeline_mode = #tpu.pipeline_mode<synchronous>, transform_indices = @transform_2, window_bounds = array<i64: 1, 32>}, {transform_indices = @transform_3, window_bounds = array<i64: 128, 32>}]} {
    %c0 = arith.constant 0 : index
    %c0_0 = arith.constant 0 : index
    %0 = vector.load %arg1[%c0, %c0_0] : memref<128x32xf32, #tpu.memory_space<vmem>>, vector<128x32xf32>
    %cst = arith.constant dense<0.000000e+00> : vector<128xf32>
    %1 = vector.multi_reduction <add>, %0, %cst [1] : vector<128x32xf32> to vector<128xf32>
    %2 = vector.shape_cast %1 : vector<128xf32> to vector<128x1xf32>
    %cst_1 = arith.constant 3.200000e+01 : f32
    %3 = vector.broadcast %cst_1 : f32 to vector<128x1xf32>
    %4 = arith.divf %2, %3 : vector<128x1xf32>
    %5 = vector.broadcast %4 : vector<128x1xf32> to vector<128x32xf32>
    %6 = arith.subf %0, %5 : vector<128x32xf32>
    %7 = arith.mulf %6, %6 : vector<128x32xf32>
    %cst_2 = arith.constant dense<0.000000e+00> : vector<128xf32>
    %8 = vector.multi_reduction <add>, %7, %cst_2 [1] : vector<128x32xf32> to vector<128xf32>
    %9 = vector.shape_cast %8 : vector<128xf32> to vector<128x1xf32>
    %cst_3 = arith.constant 3.200000e+01 : f32
    %10 = vector.broadcast %cst_3 : f32 to vector<128x1xf32>
    %11 = arith.divf %9, %10 : vector<128x1xf32>
    %cst_4 = arith.constant 9.99999997E-7 : f32
    %12 = vector.broadcast %cst_4 : f32 to vector<128x1xf32>
    %13 = arith.addf %11, %12 : vector<128x1xf32>
    %14 = math.rsqrt %13 : vector<128x1xf32>
    %15 = vector.broadcast %14 : vector<128x1xf32> to vector<128x32xf32>
    %16 = arith.mulf %6, %15 : vector<128x32xf32>
    %c0_5 = arith.constant 0 : index
    %c0_6 = arith.constant 0 : index
    %17 = vector.load %arg2[%c0_5, %c0_6] : memref<1x32xf32, #tpu.memory_space<vmem>>, vector<1x32xf32>
    %18 = vector.broadcast %17 : vector<1x32xf32> to vector<128x32xf32>
    %19 = arith.mulf %16, %18 : vector<128x32xf32>
    %c0_7 = arith.constant 0 : index
    %c0_8 = arith.constant 0 : index
    %20 = vector.load %arg3[%c0_7, %c0_8] : memref<1x32xf32, #tpu.memory_space<vmem>>, vector<1x32xf32>
    %21 = vector.broadcast %20 : vector<1x32xf32> to vector<128x32xf32>
    %22 = arith.addf %19, %21 : vector<128x32xf32>
    %23 = arith.truncf %22 : vector<128x32xf32> to vector<128x32xbf16>
    %c0_9 = arith.constant 0 : index
    %c0_10 = arith.constant 0 : index
    %24 = vector.load %arg4[%c0_9, %c0_10] : memref<128x32xbf16, #tpu.memory_space<vmem>>, vector<128x32xbf16>
    tpu.vector_store %arg4[%c0_9, %c0_10], %23 {strides = array<i32>} : memref<128x32xbf16, #tpu.memory_space<vmem>>, vector<128x32xbf16>,
    return
  }
  func.func @transform_0(%arg0: i32) -> (i32, i32) {
    %c0_i32 = arith.constant 0 : i32
    %c0_i32_0 = arith.constant 0 : i32
    return %arg0, %c0_i32 : i32, i32
  }
  func.func @transform_1(%arg0: i32) -> (i32, i32) {
    %c0_i32 = arith.constant 0 : i32
    %c0_i32_0 = arith.constant 0 : i32
    %c0_i32_1 = arith.constant 0 : i32
    return %c0_i32, %c0_i32_0 : i32, i32
  }
  func.func @transform_2(%arg0: i32) -> (i32, i32) {
    %c0_i32 = arith.constant 0 : i32
    %c0_i32_0 = arith.constant 0 : i32
    %c0_i32_1 = arith.constant 0 : i32
    return %c0_i32, %c0_i32_0 : i32, i32
  }
  func.func @transform_3(%arg0: i32) -> (i32, i32) {
    %c0_i32 = arith.constant 0 : i32
    %c0_i32_0 = arith.constant 0 : i32
    return %arg0, %c0_i32 : i32, i32
  }
}

</mosaic_0001>

<bundles_post_ra>
// kernel: tpu_custom_call.1
= control target key start
LH: loop header
LB: loop body
LE: loop exit
PB: predicated region body
PF: predicated region fallthrough
CT: control target
= control target key end

     0   :  { %vm30_vm0 = vcmask 261120   ;;  %v504_v32 = vmov 32.0   ;;  %vm446_vm5 = vcmask 257024   ;;  %s1041_s0 = inlined_call_operand.vmem [shape: f32[128,32], index: 0, kind: input, shape index: {}]   ;;  %s1042_s1 = inlined_call_operand.vmem [shape: f32[1,32], index: 1, kind: input, shape index: {}]   ;;  %s1043_s2 = inlined_call_operand.vmem [shape: f32[1,32], index: 2, kind: input, shape index: {}]   ;;  %s1044_s3 = inlined_call_operand.vmem [shape: bf16[128,32], index: 3, kind: output, shape index: {}]  }
   0x1   :  { %v528_v0 = vld [vmem:[%s1041_s0 + $0x20] sm:$0xff]  ;;  %v533_v1 = vld [vmem:[%s1041_s0 + $0x10] sm:$0xff]  ;;  %v549_v6 = vld [vmem:[%s1041_s0 + $0x28] sm:$0xff]  ;;  %470 = vrcp.f32 %v504_v32 }
   0x2   :  { %v538_v2 = vld [vmem:[%s1041_s0] sm:$0xff]  ;;  %v43_v3 = vsel %vm30_vm0, %v528_v0, 0.0  ;;  %v37_v4 = vsel %vm30_vm0, %v533_v1, 0.0  ;;  %v554_v7 = vld [vmem:[%s1041_s0 + $0x18] sm:$0xff]  ;;  %v559_v8 = vld [vmem:[%s1041_s0 + $0x8] sm:$0xff]  ;;  %v46_v9 = vsel %vm30_vm0, %v549_v6, 0.0 }
   0x3   :  { %v31_v5 = vsel %vm30_vm0, %v538_v2, 0.0  ;;  %44 = vadd.xlane.f32.xlu2 %v43_v3  ;;  %38 = vadd.xlane.f32.xlu1 %v37_v4  ;;  %v40_v10 = vsel %vm30_vm0, %v554_v7, 0.0  ;;  %v34_v11 = vsel %vm30_vm0, %v559_v8, 0.0  ;;  %v570_v12 = vld [vmem:[%s1041_s0 + $0x40] sm:$0xff]  ;;  %v575_v13 = vld [vmem:[%s1041_s0 + $0x38] sm:$0xff]  ;;  %v580_v14 = vld [vmem:[%s1041_s0 + $0x30] sm:$0xff] }
   0x4   :  { %32 = vadd.xlane.f32.xlu0 %v31_v5  ;;  %v55_v15 = vsel %vm30_vm0, %v570_v12, 0.0  ;;  %v52_v16 = vsel %vm30_vm0, %v575_v13, 0.0  ;;  %v49_v17 = vsel %vm30_vm0, %v580_v14, 0.0  ;;  %v591_v18 = vld [vmem:[%s1041_s0 + $0x58] sm:$0xff]  ;;  %v596_v19 = vld [vmem:[%s1041_s0 + $0x50] sm:$0xff]  ;;  %v601_v20 = vld [vmem:[%s1041_s0 + $0x48] sm:$0xff] }
   0x5   :  { %v64_v21 = vsel %vm30_vm0, %v591_v18, 0.0  ;;  %v61_v22 = vsel %vm30_vm0, %v596_v19, 0.0  ;;  %v58_v23 = vsel %vm30_vm0, %v601_v20, 0.0  ;;  %v612_v24 = vld [vmem:[%s1041_s0 + $0x70] sm:$0xff]  ;;  %v617_v25 = vld [vmem:[%s1041_s0 + $0x68] sm:$0xff]  ;;  %v622_v26 = vld [vmem:[%s1041_s0 + $0x60] sm:$0xff] }
   0x6   :  { %v73_v27 = vsel %vm30_vm0, %v612_v24, 0.0  ;;  %v70_v28 = vsel %vm30_vm0, %v617_v25, 0.0  ;;  %v67_v29 = vsel %vm30_vm0, %v622_v26, 0.0  ;;  %v633_v30 = vld [vmem:[%s1041_s0 + $0x78] sm:$0xff] }
   0x7   :  { %v76_v31 = vsel %vm30_vm0, %v633_v30, 0.0  ;;  %v471_v33 = vpop.eup %470 }
   0x8   :  { %v80_v34 = vmul.f32 32.0, %v471_v33  ;;  %vm84_vm1 = vweird.f32 %v471_v33 }
   0xa   :  { %v81_v35 = vsub.f32 1.0, %v80_v34 }
   0xb   :  { %47 = vadd.xlane.f32.xlu2 %v46_v9  ;;  %41 = vadd.xlane.f32.xlu1 %v40_v10 }
   0xc   :  { %35 = vadd.xlane.f32.xlu0 %v34_v11  ;;  %v82_v36 = vmul.f32 %v471_v33, %v81_v35 }
   0xe   :  { %v83_v37 = vadd.f32 %v471_v33, %v82_v36 }
  0x10   :  { %v637_v38 = vsel %vm84_vm1, %v471_v33, %v83_v37 }
  0x13   :  { %56 = vadd.xlane.f32.xlu2 %v55_v15  ;;  %53 = vadd.xlane.f32.xlu1 %v52_v16 }
  0x14   :  { %50 = vadd.xlane.f32.xlu0 %v49_v17 }
  0x1b   :  { %65 = vadd.xlane.f32.xlu2 %v64_v21  ;;  %62 = vadd.xlane.f32.xlu1 %v61_v22 }
  0x1c   :  { %59 = vadd.xlane.f32.xlu0 %v58_v23 }
  0x23   :  { %74 = vadd.xlane.f32.xlu2 %v73_v27  ;;  %71 = vadd.xlane.f32.xlu1 %v70_v28 }
  0x24   :  { %68 = vadd.xlane.f32.xlu0 %v67_v29 }
  0x2c   :  { %77 = vadd.xlane.f32.xlu0 %v76_v31 }
  0x76   :  { %v45_v39 = vpop.xlane.xlu2 %44  ;;  %v39_v40 = vpop.xlane.xlu1 %38 }
  0x77   :  { %v88_v41 = vmul.f32 %v637_v38, %v39_v40  ;;  %v33_v42 = vpop.xlane.xlu0 %32  ;;  %v90_v58 = vmul.f32 %v637_v38, %v45_v39 }
  0x78   :  { %v86_v43 = vmul.f32 %v637_v38, %v33_v42 }
  0x79   :  { %v642_v44 = vsub.f32 %v533_v1, %v88_v41 }
  0x7a   :  { %v645_v45 = vsub.f32 %v538_v2, %v86_v43  ;;  %v675_v2 = vsub.f32 %v528_v0, %v90_v58 }
  0x7b   :  { %v120_v46 = vmul.f32 %v642_v44, %v642_v44 }
  0x7c   :  { %v118_v47 = vmul.f32 %v645_v45, %v645_v45  ;;  %v122_v11 = vmul.f32 %v675_v2, %v675_v2 }
  0x7d   :  { %v140_v48 = vsel %vm30_vm0, %v120_v46, 0.0 }
  0x7e   :  { %v48_v49 = vpop.xlane.xlu2 %47  ;;  %v42_v50 = vpop.xlane.xlu1 %41  ;;  %141 = vadd.xlane.f32.xlu0 %v140_v48  ;;  %v134_v51 = vsel %vm30_vm0, %v118_v47, 0.0 }
  0x7f   :  { %v91_v52 = vmul.f32 %v637_v38, %v48_v49  ;;  %v89_v53 = vmul.f32 %v637_v38, %v42_v50  ;;  %135 = vadd.xlane.f32.xlu1 %v134_v51  ;;  %v36_v54 = vpop.xlane.xlu0 %35 }
  0x80   :  { %v87_v55 = vmul.f32 %v637_v38, %v36_v54 }
  0x81   :  { %v657_v56 = vsub.f32 %v549_v6, %v91_v52  ;;  %v660_v57 = vsub.f32 %v554_v7, %v89_v53 }
  0x82   :  { %v664_v59 = vsub.f32 %v559_v8, %v87_v55 }
  0x83   :  { %v123_v60 = vmul.f32 %v657_v56, %v657_v56  ;;  %v121_v61 = vmul.f32 %v660_v57, %v660_v57 }
  0x84   :  { %v119_v62 = vmul.f32 %v664_v59, %v664_v59 }
  0x85   :  { %v149_v63 = vsel %vm30_vm0, %v123_v60, 0.0  ;;  %v143_v1 = vsel %vm30_vm0, %v121_v61, 0.0 }
  0x86   :  { %v57_v3 = vpop.xlane.xlu2 %56  ;;  %150 = vadd.xlane.f32.xlu0 %v149_v63  ;;  %v137_v4 = vsel %vm30_vm0, %v119_v62, 0.0  ;;  %v54_v5 = vpop.xlane.xlu1 %53 }
  0x87   :  { %v94_v6 = vmul.f32 %v637_v38, %v57_v3  ;;  %144 = vadd.xlane.f32.xlu1 %v143_v1  ;;  %138 = vadd.xlane.f32.xlu2 %v137_v4  ;;  %v51_v7 = vpop.xlane.xlu0 %50  ;;  %v93_v9 = vmul.f32 %v637_v38, %v54_v5 }
  0x88   :  { %v92_v8 = vmul.f32 %v637_v38, %v51_v7 }
  0x89   :  { %v682_v10 = vsub.f32 %v570_v12, %v94_v6  ;;  %v692_v16 = vsub.f32 %v575_v13, %v93_v9  ;;  %v146_v12 = vsel %vm30_vm0, %v122_v11, 0.0 }
  0x8a   :  { %v685_v0 = vsub.f32 %v580_v14, %v92_v8 }
  0x8b   :  { %v126_v15 = vmul.f32 %v682_v10, %v682_v10  ;;  %v125_v31 = vmul.f32 %v692_v16, %v692_v16 }
  0x8c   :  { %v124_v17 = vmul.f32 %v685_v0, %v685_v0 }
  0x8d   :  { %v158_v21 = vsel %vm30_vm0, %v126_v15, 0.0  ;;  %v155_v36 = vsel %vm30_vm0, %v125_v31, 0.0 }
  0x8e   :  { %v66_v22 = vpop.xlane.xlu2 %65  ;;  %159 = vadd.xlane.f32.xlu0 %v158_v21  ;;  %v152_v14 = vsel %vm30_vm0, %v124_v17, 0.0  ;;  %v63_v23 = vpop.xlane.xlu1 %62 }
  0x8f   :  { %v97_v27 = vmul.f32 %v637_v38, %v66_v22  ;;  %147 = vadd.xlane.f32.xlu2 %v146_v12  ;;  %153 = vadd.xlane.f32.xlu1 %v152_v14  ;;  %v60_v28 = vpop.xlane.xlu0 %59  ;;  %v96_v29 = vmul.f32 %v637_v38, %v63_v23 }
  0x90   :  { %v95_v13 = vmul.f32 %v637_v38, %v60_v28 }
  0x91   :  { %v705_v32 = vsub.f32 %v591_v18, %v97_v27  ;;  %v713_v35 = vsub.f32 %v596_v19, %v96_v29 }
  0x92   :  { %v708_v33 = vsub.f32 %v601_v20, %v95_v13 }
  0x93   :  { %v129_v34 = vmul.f32 %v705_v32, %v705_v32  ;;  %v128_v46 = vmul.f32 %v713_v35, %v713_v35 }
  0x94   :  { %v127_v37 = vmul.f32 %v708_v33, %v708_v33 }
  0x95   :  { %v167_v39 = vsel %vm30_vm0, %v129_v34, 0.0  ;;  %v164_v51 = vsel %vm30_vm0, %v128_v46, 0.0 }
  0x96   :  { %v75_v40 = vpop.xlane.xlu2 %74  ;;  %168 = vadd.xlane.f32.xlu0 %v167_v39  ;;  %v161_v18 = vsel %vm30_vm0, %v127_v37, 0.0  ;;  %v72_v41 = vpop.xlane.xlu1 %71 }
  0x97   :  { %v100_v20 = vmul.f32 %v637_v38, %v75_v40  ;;  %156 = vadd.xlane.f32.xlu2 %v155_v36  ;;  %162 = vadd.xlane.f32.xlu1 %v161_v18  ;;  %v69_v42 = vpop.xlane.xlu0 %68  ;;  %v99_v43 = vmul.f32 %v637_v38, %v72_v41 }
  0x98   :  { %v98_v19 = vmul.f32 %v637_v38, %v69_v42 }
  0x99   :  { %v726_v47 = vsub.f32 %v612_v24, %v100_v20  ;;  %v734_v50 = vsub.f32 %v617_v25, %v99_v43 }
  0x9a   :  { %v729_v48 = vsub.f32 %v622_v26, %v98_v19 }
  0x9b   :  { %v132_v49 = vmul.f32 %v726_v47, %v726_v47  ;;  %v131_v55 = vmul.f32 %v734_v50, %v734_v50 }
  0x9c   :  { %v130_v52 = vmul.f32 %v729_v48, %v729_v48 }
  0x9d   :  { %v176_v53 = vsel %vm30_vm0, %v132_v49, 0.0  ;;  %v173_v58 = vsel %vm30_vm0, %v131_v55, 0.0 }
  0x9e   :  { %177 = vadd.xlane.f32.xlu0 %v176_v53  ;;  %v170_v24 = vsel %vm30_vm0, %v130_v52, 0.0 }
  0x9f   :  { %165 = vadd.xlane.f32.xlu2 %v164_v51  ;;  %171 = vadd.xlane.f32.xlu1 %v170_v24  ;;  %v78_v26 = vpop.xlane.xlu0 %77  ;;  %v781_v51 = vld [vmem:[%s1042_s1] ss:$0 sm:$0xff] }
  0xa0   :  { %v101_v54 = vmul.f32 %v637_v38, %v78_v26 }
  0xa2   :  { %v745_v25 = vsub.f32 %v633_v30, %v101_v54 }
  0xa4   :  { %v133_v60 = vmul.f32 %v745_v25, %v745_v25 }
  0xa6   :  { %v179_v61 = vsel %vm30_vm0, %v133_v60, 0.0  ;;  %v798_v60 = vld [vmem:[%s1043_s2] ss:$0 sm:$0xff] }
  0xa7   :  { %174 = vadd.xlane.f32.xlu2 %v173_v58  ;;  %180 = vadd.xlane.f32.xlu1 %v179_v61 }
  0xf1   :  { %v142_v62 = vpop.xlane.xlu0 %141 }
  0xf2   :  { %v136_v63 = vpop.xlane.xlu1 %135  ;;  %v184_v1 = vmul.f32 %v142_v62, %v637_v38 }
  0xf3   :  { %v182_v3 = vmul.f32 %v136_v63, %v637_v38 }
  0xf4   :  { %v200_v4 = vadd.f32 1e-06, %v184_v1 }
  0xf5   :  { %v198_v5 = vadd.f32 1e-06, %v182_v3 }
  0xf6   :  { %472 = vrsqrt.f32 %v200_v4  ;;  %vm240_vm4 = vweird.f32 %v200_v4 }
  0xf7   :  { %474 = vrsqrt.f32 %v198_v5  ;;  %vm220_vm6 = vweird.f32 %v198_v5 }
  0xf9   :  { %v151_v30 = vpop.xlane.xlu0 %150 }
  0xfa   :  { %v145_v6 = vpop.xlane.xlu1 %144  ;;  %v139_v7 = vpop.xlane.xlu2 %138  ;;  %v187_v8 = vmul.f32 %v151_v30, %v637_v38 }
  0xfb   :  { %v185_v9 = vmul.f32 %v145_v6, %v637_v38  ;;  %v183_v11 = vmul.f32 %v139_v7, %v637_v38 }
  0xfc   :  { %v473_v15 = vpop.eup %472  ;;  %v756_v17 = vadd.f32 1e-06, %v187_v8 }
  0xfd   :  { %v475_v21 = vpop.eup %474  ;;  %v235_v22 = vmul.f32 %v473_v15, %v200_v4  ;;  %v758_v12 = vadd.f32 1e-06, %v185_v9  ;;  %v760_v14 = vadd.f32 1e-06, %v183_v11  ;;  %vm241_vm2 = vweird.f32 %v473_v15 }
  0xfe   :  { %v215_v23 = vmul.f32 %v475_v21, %v198_v5  ;;  %476 = vrsqrt.f32 %v756_v17  ;;  %vm221_vm3 = vweird.f32 %v475_v21  ;;  %vm242_vm7 = vmor %vm240_vm4, %vm241_vm2  ;;  %vm270_vm8 = vweird.f32 %v756_v17 }
  0xff   :  { %v236_v27 = vmul.f32 %v473_v15, %v235_v22  ;;  %478 = vrsqrt.f32 %v758_v12  ;;  %vm222_vm9 = vmor %vm220_vm6, %vm221_vm3  ;;  %vm250_vm10 = vweird.f32 %v758_v12  ;;  %vm230_vm14 = vweird.f32 %v760_v14 }
 0x100   :  { %v216_v28 = vmul.f32 %v475_v21, %v215_v23  ;;  %480 = vrsqrt.f32 %v760_v14 }
 0x101   :  { %v237_v13 = vmul.f32 0.5, %v236_v27  ;;  %v160_v29 = vpop.xlane.xlu0 %159 }
 0x102   :  { %v217_v31 = vmul.f32 0.5, %v216_v28  ;;  %v148_v34 = vpop.xlane.xlu2 %147  ;;  %v154_v36 = vpop.xlane.xlu1 %153  ;;  %v190_v18 = vmul.f32 %v160_v29, %v637_v38 }
 0x103   :  { %v238_v37 = vsub.f32 1.5, %v237_v13  ;;  %v186_v39 = vmul.f32 %v148_v34, %v637_v38  ;;  %v188_v40 = vmul.f32 %v154_v36, %v637_v38 }
 0x104   :  { %v768_v41 = vpop.eup %476  ;;  %v218_v20 = vsub.f32 1.5, %v217_v31  ;;  %v793_v58 = vadd.f32 1e-06, %v190_v18 }
 0x105   :  { %v770_v42 = vpop.eup %478  ;;  %v239_v19 = vmul.f32 %v473_v15, %v238_v37  ;;  %v265_v43 = vmul.f32 %v768_v41, %v756_v17  ;;  %v774_v46 = vadd.f32 1e-06, %v186_v39  ;;  %v787_v24 = vadd.f32 1e-06, %v188_v40 }
 0x106   :  { %v776_v49 = vpop.eup %480  ;;  %v219_v52 = vmul.f32 %v475_v21, %v218_v20  ;;  %v245_v53 = vmul.f32 %v770_v42, %v758_v12  ;;  %vm271_vm11 = vweird.f32 %v768_v41  ;;  %vm251_vm12 = vweird.f32 %v770_v42 }
 0x107   :  { %v243_v26 = vsel %vm242_vm7, %v473_v15, %v239_v19  ;;  %v225_v54 = vmul.f32 %v776_v49, %v760_v14  ;;  %v266_v55 = vmul.f32 %v768_v41, %v265_v43  ;;  %482 = vrsqrt.f32 %v774_v46  ;;  %vm272_vm15 = vmor %vm270_vm8, %vm271_vm11 }
 0x108   :  { %v223_v61 = vsel %vm222_vm9, %v475_v21, %v219_v52  ;;  %v376_v62 = vmul.f32 %v243_v26, %v642_v44  ;;  %v246_v63 = vmul.f32 %v770_v42, %v245_v53  ;;  %484 = vrsqrt.f32 %v787_v24  ;;  %vm831_vm0 = vmor %vm250_vm10, %vm251_vm12 }
 0x109   :  { %v374_v1 = vmul.f32 %v223_v61, %v645_v45  ;;  %v226_v3 = vmul.f32 %v776_v49, %v225_v54  ;;  %v267_v4 = vmul.f32 0.5, %v266_v55  ;;  %486 = vrsqrt.f32 %v793_v58  ;;  %v169_v17 = vpop.xlane.xlu0 %168 }
 0x10a   :  { %v396_v5 = vmul.f32 %v781_v51, %v376_v62  ;;  %v247_v30 = vmul.f32 0.5, %v246_v63  ;;  %v157_v6 = vpop.xlane.xlu2 %156  ;;  %vm231_vm13 = vweird.f32 %v776_v49  ;;  %v163_v23 = vpop.xlane.xlu1 %162  ;;  %vm260_vm1 = vweird.f32 %v774_v46 }
 0x10b   :  { %v394_v44 = vmul.f32 %v781_v51, %v374_v1  ;;  %v227_v7 = vmul.f32 0.5, %v226_v3  ;;  %v268_v8 = vsub.f32 1.5, %v267_v4  ;;  %v189_v11 = vmul.f32 %v157_v6, %v637_v38  ;;  %vm232_vm2 = vmor %vm230_vm14, %vm231_vm13 }
 0x10c   :  { %v416_v45 = vadd.f32 %v798_v60, %v396_v5  ;;  %v248_v9 = vsub.f32 1.5, %v247_v30  ;;  %vm300_vm3 = vweird.f32 %v793_v58  ;;  %v191_v18 = vmul.f32 %v163_v23, %v637_v38 }
 0x10d   :  { %v414_v15 = vadd.f32 %v798_v60, %v394_v44  ;;  %v228_v21 = vsub.f32 1.5, %v227_v7  ;;  %v269_v22 = vmul.f32 %v768_v41, %v268_v8  ;;  %v817_v27 = vpop.eup %482  ;;  %v825_v29 = vadd.f32 1e-06, %v189_v11 }
 0x10e   :  { %v432_v28 = vpack.c.bf16 %v416_v45, %v416_v45  ;;  %v249_v13 = vmul.f32 %v770_v42, %v248_v9  ;;  %v255_v37 = vmul.f32 %v817_v27, %v774_v46  ;;  %v840_v39 = vpop.eup %484  ;;  %v193_v26 = vmul.f32 %v169_v17, %v637_v38 }
 0x10f   :  { %v430_v31 = vpack.c.bf16 %v414_v15, %v414_v15  ;;  %v229_v36 = vmul.f32 %v776_v49, %v228_v21  ;;  %v273_v14 = vsel %vm272_vm15, %v768_v41, %v269_v22  ;;  %488 = vrsqrt.f32 %v825_v29  ;;  %v487_v41 = vpop.eup %486 }
 0x110   :  { %449 = vst.msk [vmem:[%s1044_s3 + $0x8] sm:$0xf] %vm446_vm5, %v432_v28  ;;  %v253_v12 = vsel %vm831_vm0, %v770_v42, %v249_v13  ;;  %v379_v40 = vmul.f32 %v273_v14, %v657_v56  ;;  %v256_v19 = vmul.f32 %v817_v27, %v255_v37  ;;  %v275_v56 = vmul.f32 %v840_v39, %v787_v24 }
 0x111   :  { %447 = vst.msk [vmem:[%s1044_s3] sm:$0xf] %vm446_vm5, %v430_v31  ;;  %v377_v20 = vmul.f32 %v253_v12, %v660_v57  ;;  %v233_v42 = vsel %vm232_vm2, %v776_v49, %v229_v36  ;;  %v295_v53 = vmul.f32 %v487_v41, %v793_v58  ;;  %vm261_vm4 = vweird.f32 %v817_v27  ;;  %v178_v46 = vpop.xlane.xlu0 %177 }
 0x112   :  { %v375_v43 = vmul.f32 %v233_v42, %v664_v59  ;;  %v399_v52 = vmul.f32 %v781_v51, %v379_v40  ;;  %v257_v55 = vmul.f32 0.5, %v256_v19  ;;  %v276_v57 = vmul.f32 %v840_v39, %v275_v56  ;;  %v166_v49 = vpop.xlane.xlu2 %165  ;;  %vm262_vm7 = vmor %vm260_vm1, %vm261_vm4  ;;  %v172_v22 = vpop.xlane.xlu1 %171 }
 0x113   :  { %v397_v54 = vmul.f32 %v781_v51, %v377_v20  ;;  %vm281_vm6 = vweird.f32 %v840_v39  ;;  %v296_v59 = vmul.f32 %v487_v41, %v295_v53  ;;  %v875_v4 = vadd.f32 1e-06, %v191_v18 }
 0x114   :  { %v395_v61 = vmul.f32 %v781_v51, %v375_v43  ;;  %v419_v62 = vadd.f32 %v798_v60, %v399_v52  ;;  %v258_v1 = vsub.f32 1.5, %v257_v55  ;;  %v277_v3 = vmul.f32 0.5, %v276_v57 }
 0x115   :  { %v417_v63 = vadd.f32 %v798_v60, %v397_v54  ;;  %v877_v5 = vpop.eup %488  ;;  %v297_v44 = vmul.f32 0.5, %v296_v59  ;;  %v880_v7 = vadd.f32 1e-06, %v193_v26  ;;  %vm301_vm8 = vweird.f32 %v487_v41 }
 0x116   :  { %v415_v30 = vadd.f32 %v798_v60, %v395_v61  ;;  %v435_v6 = vpack.c.bf16 %v419_v62, %v419_v62  ;;  %v259_v45 = vmul.f32 %v817_v27, %v258_v1  ;;  %v278_v9 = vsub.f32 1.5, %v277_v3  ;;  %vm302_vm11 = vmor %vm300_vm3, %vm301_vm8 }
 0x117   :  { %v433_v8 = vpack.c.bf16 %v417_v63, %v417_v63  ;;  %v285_v11 = vmul.f32 %v877_v5, %v825_v29  ;;  %v298_v21 = vsub.f32 1.5, %v297_v44  ;;  %490 = vrsqrt.f32 %v875_v4 }
 0x118   :  { %v431_v15 = vpack.c.bf16 %v415_v30, %v415_v30  ;;  %452 = vst.msk [vmem:[%s1044_s3 + $0x14] sm:$0xf] %vm446_vm5, %v435_v6  ;;  %v263_v23 = vsel %vm262_vm7, %v817_v27, %v259_v45  ;;  %v279_v28 = vmul.f32 %v840_v39, %v278_v9  ;;  %vm280_vm9 = vweird.f32 %v787_v24 }
 0x119   :  { %450 = vst.msk [vmem:[%s1044_s3 + $0xc] sm:$0xf] %vm446_vm5, %v433_v8  ;;  %v286_v13 = vmul.f32 %v877_v5, %v285_v11  ;;  %v378_v31 = vmul.f32 %v263_v23, %v675_v2  ;;  %vm282_vm10 = vmor %vm280_vm9, %vm281_vm6  ;;  %v299_v34 = vmul.f32 %v487_v41, %v298_v21  ;;  %492 = vrsqrt.f32 %v880_v7 }
 0x11a   :  { %448 = vst.msk [vmem:[%s1044_s3 + $0x4] sm:$0xf] %vm446_vm5, %v431_v15  ;;  %v283_v27 = vsel %vm282_vm10, %v840_v39, %v279_v28  ;;  %v192_v36 = vmul.f32 %v166_v49, %v637_v38  ;;  %v194_v14 = vmul.f32 %v172_v22, %v637_v38  ;;  %v196_v12 = vmul.f32 %v178_v46, %v637_v38  ;;  %v175_v58 = vpop.xlane.xlu2 %174  ;;  %v181_v59 = vpop.xlane.xlu1 %180 }
 0x11b   :  { %v287_v24 = vmul.f32 0.5, %v286_v13  ;;  %v398_v37 = vmul.f32 %v781_v51, %v378_v31  ;;  %v380_v2 = vmul.f32 %v283_v27, %v685_v0  ;;  %v303_v17 = vsel %vm302_vm11, %v487_v41, %v299_v34 }
 0x11c   :  { %v382_v40 = vmul.f32 %v303_v17, %v682_v10  ;;  %vm291_vm12 = vweird.f32 %v877_v5  ;;  %v921_v39 = vadd.f32 1e-06, %v192_v36  ;;  %vm290_vm13 = vweird.f32 %v825_v29 }
 0x11d   :  { %v288_v18 = vsub.f32 1.5, %v287_v24  ;;  %v491_v20 = vpop.eup %490  ;;  %v418_v42 = vadd.f32 %v798_v60, %v398_v37  ;;  %v400_v19 = vmul.f32 %v781_v51, %v380_v2  ;;  %v926_v56 = vadd.f32 1e-06, %v194_v14  ;;  %vm292_vm14 = vmor %vm290_vm13, %vm291_vm12 }
 0x11e   :  { %v402_v0 = vmul.f32 %v781_v51, %v382_v40  ;;  %v305_v10 = vmul.f32 %v491_v20, %v875_v4  ;;  %v931_v43 = vadd.f32 1e-06, %v196_v12  ;;  %494 = vrsqrt.f32 %v921_v39 }
 0x11f   :  { %v289_v41 = vmul.f32 %v877_v5, %v288_v18  ;;  %v493_v52 = vpop.eup %492  ;;  %v434_v53 = vpack.c.bf16 %v418_v42, %v418_v42  ;;  %v420_v26 = vadd.f32 %v798_v60, %v400_v19  ;;  %v195_v29 = vmul.f32 %v175_v58, %v637_v38 }
 0x120   :  { %v422_v54 = vadd.f32 %v798_v60, %v402_v0  ;;  %v306_v57 = vmul.f32 %v491_v20, %v305_v10  ;;  %v325_v49 = vmul.f32 %v493_v52, %v880_v7  ;;  %496 = vrsqrt.f32 %v926_v56 }
 0x121   :  { %v293_v55 = vsel %vm292_vm14, %v877_v5, %v289_v41  ;;  %451 = vst.msk [vmem:[%s1044_s3 + $0x10] sm:$0xf] %vm446_vm5, %v434_v53  ;;  %v436_v61 = vpack.c.bf16 %v420_v26, %v420_v26  ;;  %498 = vrsqrt.f32 %v931_v43  ;;  %v953_v30 = vadd.f32 1e-06, %v195_v29 }
 0x122   :  { %v381_v62 = vmul.f32 %v293_v55, %v692_v16  ;;  %v438_v63 = vpack.c.bf16 %v422_v54, %v422_v54  ;;  %v307_v1 = vmul.f32 0.5, %v306_v57  ;;  %v326_v3 = vmul.f32 %v493_v52, %v325_v49 }
 0x123   :  { %453 = vst.msk [vmem:[%s1044_s3 + $0x18] sm:$0xf] %vm446_vm5, %v436_v61  ;;  %vm311_vm15 = vweird.f32 %v491_v20  ;;  %v197_v44 = vmul.f32 %v181_v59, %v637_v38  ;;  %vm310_vm0 = vweird.f32 %v875_v4  ;;  %vm330_vm1 = vweird.f32 %v880_v7 }
 0x124   :  { %v401_v5 = vmul.f32 %v781_v51, %v381_v62  ;;  %455 = vst.msk [vmem:[%s1044_s3 + $0x20] sm:$0xf] %vm446_vm5, %v438_v63  ;;  %v308_v16 = vsub.f32 1.5, %v307_v1  ;;  %v327_v6 = vmul.f32 0.5, %v326_v3  ;;  %v495_v8 = vpop.eup %494  ;;  %500 = vrsqrt.f32 %v953_v30  ;;  %vm312_vm3 = vmor %vm310_vm0, %vm311_vm15 }
 0x125   :  { %vm331_vm2 = vweird.f32 %v493_v52  ;;  %v315_v15 = vmul.f32 %v495_v8, %v921_v39  ;;  %v965_v23 = vadd.f32 1e-06, %v197_v44  ;;  %vm320_vm6 = vweird.f32 %v921_v39 }
 0x126   :  { %v421_v45 = vadd.f32 %v798_v60, %v401_v5  ;;  %v309_v9 = vmul.f32 %v491_v20, %v308_v16  ;;  %v328_v11 = vsub.f32 1.5, %v327_v6  ;;  %v497_v21 = vpop.eup %496  ;;  %vm332_vm4 = vmor %vm330_vm1, %vm331_vm2  ;;  %vm321_vm7 = vweird.f32 %v495_v8 }
 0x127   :  { %v316_v13 = vmul.f32 %v495_v8, %v315_v15  ;;  %v335_v46 = vmul.f32 %v497_v21, %v926_v56  ;;  %v499_v4 = vpop.eup %498  ;;  %502 = vrsqrt.f32 %v965_v23  ;;  %vm340_vm8 = vweird.f32 %v926_v56  ;;  %vm322_vm10 = vmor %vm320_vm6, %vm321_vm7 }
 0x128   :  { %v437_v22 = vpack.c.bf16 %v421_v45, %v421_v45  ;;  %v313_v38 = vsel %vm312_vm3, %v491_v20, %v309_v9  ;;  %v329_v28 = vmul.f32 %v493_v52, %v328_v11  ;;  %v355_v36 = vmul.f32 %v499_v4, %v931_v43 }
 0x129   :  { %v383_v31 = vmul.f32 %v313_v38, %v708_v33  ;;  %v317_v27 = vmul.f32 0.5, %v316_v13  ;;  %v336_v24 = vmul.f32 %v497_v21, %v335_v46  ;;  %vm341_vm9 = vweird.f32 %v497_v21 }
 0x12a   :  { %454 = vst.msk [vmem:[%s1044_s3 + $0x1c] sm:$0xf] %vm446_vm5, %v437_v22  ;;  %v333_v34 = vsel %vm332_vm4, %v493_v52, %v329_v28  ;;  %v501_v14 = vpop.eup %500  ;;  %v356_v12 = vmul.f32 %v499_v4, %v355_v36  ;;  %vm360_vm11 = vweird.f32 %v931_v43  ;;  %vm361_vm12 = vweird.f32 %v499_v4  ;;  %vm342_vm13 = vmor %vm340_vm8, %vm341_vm9 }
 0x12b   :  { %v403_v37 = vmul.f32 %v781_v51, %v383_v31  ;;  %v385_v2 = vmul.f32 %v333_v34, %v705_v32  ;;  %v318_v17 = vsub.f32 1.5, %v317_v27  ;;  %v337_v33 = vmul.f32 0.5, %v336_v24  ;;  %vm362_vm15 = vmor %vm360_vm11, %vm361_vm12 }
 0x12c   :  { %v345_v7 = vmul.f32 %v501_v14, %v953_v30  ;;  %v357_v42 = vmul.f32 0.5, %v356_v12  ;;  %vm351_vm14 = vweird.f32 %v501_v14  ;;  %vm350_vm0 = vweird.f32 %v953_v30 }
 0x12d   :  { %v423_v40 = vadd.f32 %v798_v60, %v403_v37  ;;  %v405_v18 = vmul.f32 %v781_v51, %v385_v2  ;;  %v319_v58 = vmul.f32 %v495_v8, %v318_v17  ;;  %v338_v20 = vsub.f32 1.5, %v337_v33  ;;  %v503_v32 = vpop.eup %502  ;;  %vm352_vm1 = vmor %vm350_vm0, %vm351_vm14 }
 0x12e   :  { %v346_v19 = vmul.f32 %v501_v14, %v345_v7  ;;  %v358_v53 = vsub.f32 1.5, %v357_v42  ;;  %v365_v39 = vmul.f32 %v503_v32, %v965_v23  ;;  %vm371_vm2 = vweird.f32 %v503_v32 }
 0x12f   :  { %v439_v0 = vpack.c.bf16 %v423_v40, %v423_v40  ;;  %v425_v41 = vadd.f32 %v798_v60, %v405_v18  ;;  %v323_v10 = vsel %vm322_vm10, %v495_v8, %v319_v58  ;;  %v339_v52 = vmul.f32 %v497_v21, %v338_v20 }
 0x130   :  { %v347_v26 = vmul.f32 0.5, %v346_v19  ;;  %v384_v54 = vmul.f32 %v323_v10, %v713_v35  ;;  %v359_v57 = vmul.f32 %v499_v4, %v358_v53  ;;  %v366_v35 = vmul.f32 %v503_v32, %v365_v39 }
 0x131   :  { %456 = vst.msk [vmem:[%s1044_s3 + $0x24] sm:$0xf] %vm446_vm5, %v439_v0  ;;  %v441_v29 = vpack.c.bf16 %v425_v41, %v425_v41  ;;  %v343_v55 = vsel %vm342_vm13, %v497_v21, %v339_v52  ;;  %vm370_vm3 = vweird.f32 %v965_v23 }
 0x132   :  { %v348_v49 = vsub.f32 1.5, %v347_v26  ;;  %v404_v61 = vmul.f32 %v781_v51, %v384_v54  ;;  %v386_v62 = vmul.f32 %v343_v55, %v729_v48  ;;  %v363_v56 = vsel %vm362_vm15, %v499_v4, %v359_v57  ;;  %vm372_vm4 = vmor %vm370_vm3, %vm371_vm2 }
 0x133   :  { %458 = vst.msk [vmem:[%s1044_s3 + $0x2c] sm:$0xf] %vm446_vm5, %v441_v29  ;;  %v388_v3 = vmul.f32 %v363_v56, %v726_v47  ;;  %v367_v5 = vmul.f32 0.5, %v366_v35 }
 0x134   :  { %v349_v59 = vmul.f32 %v501_v14, %v348_v49  ;;  %v424_v63 = vadd.f32 %v798_v60, %v404_v61  ;;  %v406_v1 = vmul.f32 %v781_v51, %v386_v62 }
 0x135   :  { %v408_v43 = vmul.f32 %v781_v51, %v388_v3  ;;  %v368_v8 = vsub.f32 1.5, %v367_v5 }
 0x136   :  { %v353_v16 = vsel %vm352_vm1, %v501_v14, %v349_v59  ;;  %v440_v6 = vpack.c.bf16 %v424_v63, %v424_v63  ;;  %v426_v48 = vadd.f32 %v798_v60, %v406_v1 }
 0x137   :  { %v387_v44 = vmul.f32 %v353_v16, %v734_v50  ;;  %v428_v47 = vadd.f32 %v798_v60, %v408_v43  ;;  %v369_v9 = vmul.f32 %v503_v32, %v368_v8 }
 0x138   :  { %457 = vst.msk [vmem:[%s1044_s3 + $0x28] sm:$0xf] %vm446_vm5, %v440_v6  ;;  %v442_v30 = vpack.c.bf16 %v426_v48, %v426_v48 }
 0x139   :  { %v407_v45 = vmul.f32 %v781_v51, %v387_v44  ;;  %v444_v50 = vpack.c.bf16 %v428_v47, %v428_v47  ;;  %v373_v15 = vsel %vm372_vm4, %v503_v32, %v369_v9 }
 0x13a   :  { %459 = vst.msk [vmem:[%s1044_s3 + $0x30] sm:$0xf] %vm446_vm5, %v442_v30  ;;  %v389_v22 = vmul.f32 %v373_v15, %v745_v25 }
 0x13b   :  { %v427_v11 = vadd.f32 %v798_v60, %v407_v45  ;;  %461 = vst.msk [vmem:[%s1044_s3 + $0x38] sm:$0xf] %vm446_vm5, %v444_v50 }
 0x13c   :  { %v409_v23 = vmul.f32 %v781_v51, %v389_v22 }
 0x13d   :  { %v443_v21 = vpack.c.bf16 %v427_v11, %v427_v11 }
 0x13e   :  { %v429_v38 = vadd.f32 %v798_v60, %v409_v23 }
 0x13f   :  { %460 = vst.msk [vmem:[%s1044_s3 + $0x34] sm:$0xf] %vm446_vm5, %v443_v21 }
 0x140   :  { %v445_v28 = vpack.c.bf16 %v429_v38, %v429_v38 }
 0x142   :  { %462 = vst.msk [vmem:[%s1044_s3 + $0x3c] sm:$0xf] %vm446_vm5, %v445_v28 }

</bundles_post_ra>
